<compile_context>
chip_gen: v6e
topology: v6e:2x2x1
jax: 0.10.0
libtpu: 0.0.40
codegen_flags: <defaults>
</compile_context>

<pallas_src>
import functools

import jax
import jax.numpy as jnp
from jax.experimental import pallas as pl
from jax.experimental.pallas import tpu as pltpu

_MIB = 1024 * 1024


def _round_up(v, m):
    return (v + m - 1) // m * m


def _vmem_budget_bytes():
    """Per-generation scoped-VMEM cap with headroom (v7x: 64 MiB physical)."""
    cap = 64 * _MIB  # conservative fallback (v7x per-TC VMEM)
    try:
        info = pltpu.get_tpu_info()
        cap = int(getattr(info, "vmem_capacity_bytes", cap))
    except Exception:
        pass
    # ~80% of physical VMEM, never above 100 MiB (plenty on v5e/v6e).
    return min(cap * 4 // 5, 100 * _MIB)


# --------------------------------------------------------------------------- #
# Kernels
# --------------------------------------------------------------------------- #
def _fused_small_kernel(x_ref, w_ref, a_ref, b_ref, o_ref, *, swap):
    """Whole (padded) problem for one batch element in a single block."""
    x = x_ref[0]                                   # (Np, Ip), mxu dtype
    if swap:                                       # (A @ X) @ W
        ax = jnp.dot(a_ref[...], x, preferred_element_type=jnp.float32)
        out = jnp.dot(ax.astype(x.dtype), w_ref[...],
                      preferred_element_type=jnp.float32)
    else:                                          # A @ (X @ W)
        xw = jnp.dot(x, w_ref[...], preferred_element_type=jnp.float32)
        out = jnp.dot(a_ref[...], xw.astype(x.dtype),
                      preferred_element_type=jnp.float32)
    o_ref[0] = (out + b_ref[...]).astype(o_ref.dtype)


def _feature_kernel(z_ref, w_ref, b_ref, o_ref, *, add_bias):
    """One row tile of one batch element: out = z @ W (+ bias)."""
    out = jnp.dot(z_ref[0], w_ref[...], preferred_element_type=jnp.float32)
    if add_bias:
        out = out + b_ref[...]
    o_ref[0] = out.astype(o_ref.dtype)


def _adjacency_kernel(a_ref, z_ref, b_ref, o_ref, acc_ref, *, add_bias):
    """K-tiled out[i, b] = sum_k A[i, k] @ z[b, k]  (+ bias on finalize)."""
    k = pl.program_id(2)

    @pl.when(k == 0)
    def _():
        acc_ref[...] = jnp.zeros_like(acc_ref)

    acc_ref[...] += jnp.dot(a_ref[...], z_ref[0],
                            preferred_element_type=jnp.float32)

    @pl.when(k == pl.num_programs(2) - 1)
    def _():
        out = acc_ref[...]
        if add_bias:
            out = out + b_ref[...]
        o_ref[0] = out.astype(o_ref.dtype)


# --------------------------------------------------------------------------- #
# Wrapper
# --------------------------------------------------------------------------- #
def graph_cnn_layer(x, adj, weights, biases, *, mxu_dtype=None,
                    single_buffer_invariants=False):
    """x: (B, N, in_dim), adj: (N, N), weights: (in_dim, out_dim), biases: (out_dim,).

    mxu_dtype: dtype used for MXU operands and the intermediate product
      (e.g. jnp.bfloat16 on v6e/v7x).  Accumulation is always f32.
    single_buffer_invariants: single-buffer W / bias blocks (frees VMEM on v7x).
    """
    B, N, in_dim = x.shape
    assert adj.shape == (N, N)
    out_dim = weights.shape[1]
    out_dtype = x.dtype
    op_dtype = jnp.dtype(mxu_dtype) if mxu_dtype is not None else jnp.dtype(x.dtype)

    # Lane-dense padding: every tiled dim a multiple of 128.
    Ip = _round_up(in_dim, 128)
    Op = _round_up(out_dim, 128)
    Np = _round_up(N, 128)

    elt = op_dtype.itemsize
    out_elt = jnp.dtype(out_dtype).itemsize

    # TODO(synk): when adj / weights are static across many calls, hoist this
    # padding + cast out of the per-call path.
    xp = jnp.zeros((B, Np, Ip), op_dtype).at[:, :N, :in_dim].set(x.astype(op_dtype))
    ap = jnp.zeros((Np, Np), op_dtype).at[:N, :N].set(adj.astype(op_dtype))
    wp = jnp.zeros((Ip, Op), op_dtype).at[:in_dim, :out_dim].set(
        weights.astype(op_dtype))
    bp = jnp.zeros((1, Op), jnp.float32).at[0, :out_dim].set(
        biases.astype(jnp.float32))

    # Association on padded dims; prefer (A@X)@W on ties (no serialization).
    swap = Ip <= Op                    # True -> (A@X)@W ; False -> A@(X@W)
    F_adj = Ip if swap else Op         # width of the adjacency-contraction output
    adj_out_elt = elt if swap else out_elt
    feat_out_elt = out_elt if swap else elt

    budget = _vmem_budget_bytes()

    def inv_spec(shape, index_map):
        # Grid-invariant operands; optionally single-buffered (v7x VMEM relief).
        if single_buffer_invariants:
            return pl.BlockSpec(shape, index_map, pipeline_mode=pl.Buffered(1))
        return pl.BlockSpec(shape, index_map)

    def cparams(dims, ws_bytes):
        limit = int(min(budget, max(32 * _MIB, ws_bytes * 5 // 4)))
        return pltpu.CompilerParams(dimension_semantics=dims,
                                    vmem_limit_bytes=limit)

    # ------------------------- small-problem fast path ----------------------- #
    fused_ws = (2 * Np * Ip * elt            # x (double buffered)
                + Np * Np * elt              # A (invariant)
                + Ip * Op * elt              # W (invariant)
                + 2 * Np * Op * out_elt      # out
                + 4 * Np * max(Ip, Op)       # f32 intermediate
                + 2 * Op * 4)                # bias
    if Np <= 256 and Ip <= 512 and Op <= 512 and fused_ws <= budget // 2:
        flops = 2 * B * (Np * Ip * Op + Np * Np * F_adj)
        io = (B * Np * Ip * elt + Np * Np * elt + Ip * Op * elt + Op * 4
              + B * Np * Op * out_elt)
        out_padded = pl.pallas_call(
            functools.partial(_fused_small_kernel, swap=swap),
            out_shape=jax.ShapeDtypeStruct((B, Np, Op), out_dtype),
            grid_spec=pltpu.PrefetchScalarGridSpec(
                num_scalar_prefetch=0,
                grid=(B,),
                in_specs=[
                    pl.BlockSpec((1, Np, Ip), lambda b: (b, 0, 0)),
                    inv_spec((Ip, Op), lambda b: (0, 0)),
                    inv_spec((Np, Np), lambda b: (0, 0)),
                    inv_spec((1, Op), lambda b: (0, 0)),
                ],
                out_specs=pl.BlockSpec((1, Np, Op), lambda b: (b, 0, 0)),
            ),
            compiler_params=cparams(("parallel",), fused_ws),
            cost_estimate=pl.CostEstimate(flops=int(flops), transcendentals=0,
                                          bytes_accessed=int(io)),
        )(xp, wp, ap, bp)
        return out_padded[:, :N, :out_dim]

    # ------------------------------ general path ----------------------------- #
    def adj_ws(tm, tk):
        return (2 * tm * tk * elt                 # A tiles
                + 2 * tk * F_adj * elt            # Z tiles
                + 2 * tm * F_adj * adj_out_elt    # out tiles
                + 4 * tm * F_adj                  # f32 accumulator
                + 2 * Op * 4)                     # bias

    def feat_ws(tm):
        return (2 * tm * Ip * elt
                + 2 * Ip * Op * elt               # W (assume double buffered)
                + 2 * tm * Op * feat_out_elt
                + 2 * Op * 4)

    tile_budget = budget * 3 // 5                 # slack for compiler temporaries
    TM = 128
    for cand in (512, 256):
        if Np % cand == 0 and feat_ws(cand) <= tile_budget \
                and adj_ws(cand, 128) <= tile_budget:
            TM = cand
            break
    TK = 128
    for cand in (1024, 512, 256):
        if Np % cand == 0 and adj_ws(TM, cand) <= tile_budget:
            TK = cand
            break
    n_rows = Np // TM
    n_k = Np // TK

    def feature_call(z, add_bias, o_dtype):
        o_elt_ = jnp.dtype(o_dtype).itemsize
        flops = 2 * B * Np * Ip * Op
        io = B * Np * Ip * elt + Ip * Op * elt + Op * 4 + B * Np * Op * o_elt_
        return pl.pallas_call(
            functools.partial(_feature_kernel, add_bias=add_bias),
            out_shape=jax.ShapeDtypeStruct((B, Np, Op), o_dtype),
            grid_spec=pltpu.PrefetchScalarGridSpec(
                num_scalar_prefetch=0,
                grid=(n_rows, B),
                in_specs=[
                    pl.BlockSpec((1, TM, Ip), lambda i, b: (b, i, 0)),
                    inv_spec((Ip, Op), lambda i, b: (0, 0)),
                    inv_spec((1, Op), lambda i, b: (0, 0)),
                ],
                out_specs=pl.BlockSpec((1, TM, Op), lambda i, b: (b, i, 0)),
            ),
            compiler_params=cparams(("parallel", "parallel"), feat_ws(TM)),
            cost_estimate=pl.CostEstimate(flops=int(flops), transcendentals=0,
                                          bytes_accessed=int(io)),
        )(z, wp, bp)

    def adjacency_call(z, add_bias, o_dtype):
        Fz = z.shape[-1]
        z_elt = jnp.dtype(z.dtype).itemsize
        o_elt_ = jnp.dtype(o_dtype).itemsize
        flops = 2 * B * Np * Np * Fz
        # A row tiles are re-streamed once per batch element under this grid.
        io = (B * Np * Np * elt + n_rows * B * Np * Fz * z_elt + Op * 4
              + B * Np * Fz * o_elt_)
        return pl.pallas_call(
            functools.partial(_adjacency_kernel, add_bias=add_bias),
            out_shape=jax.ShapeDtypeStruct((B, Np, Fz), o_dtype),
            grid_spec=pltpu.PrefetchScalarGridSpec(
                num_scalar_prefetch=0,
                grid=(n_rows, B, n_k),
                in_specs=[
                    pl.BlockSpec((TM, TK), lambda i, b, k: (i, k)),
                    pl.BlockSpec((1, TK, Fz), lambda i, b, k: (b, k, 0)),
                    inv_spec((1, Op), lambda i, b, k: (0, 0)),
                ],
                out_specs=pl.BlockSpec((1, TM, Fz), lambda i, b, k: (b, i, 0)),
                scratch_shapes=[pltpu.VMEM((TM, Fz), jnp.float32)],
            ),
            compiler_params=cparams(("parallel", "parallel", "arbitrary"),
                                    adj_ws(TM, TK)),
            cost_estimate=pl.CostEstimate(flops=int(flops), transcendentals=0,
                                          bytes_accessed=int(io)),
        )(ap, z, bp)

    if swap:
        # (A @ X) @ W : adjacency contraction first, bias added in feature stage.
        z = adjacency_call(xp, add_bias=False, o_dtype=op_dtype)     # (B, Np, Ip)
        out_padded = feature_call(z, add_bias=True, o_dtype=out_dtype)
    else:
        # A @ (X @ W) : feature matmul first, bias added in adjacency stage.
        z = feature_call(xp, add_bias=False, o_dtype=op_dtype)       # (B, Np, Op)
        out_padded = adjacency_call(z, add_bias=True, o_dtype=out_dtype)

    return out_padded[:, :N, :out_dim]


# --------------------------------------------------------------------------- #
# Reference / init
# --------------------------------------------------------------------------- #
def init_params(key, in_dim, out_dim):
    # nn.init.xavier_uniform_ with gain = calculate_gain('relu') = sqrt(2)
    gain = jnp.sqrt(2.0)
    bound = gain * jnp.sqrt(6.0 / (in_dim + out_dim))
    weights = jax.random.uniform(key, (in_dim, out_dim), jnp.float32,
                                 minval=-bound, maxval=bound)
    biases = jnp.zeros((out_dim,), jnp.float32)
    return weights, biases


def reference(x, adj, weights, biases):
    out = jnp.einsum("bni,io->bno", x, weights)
    out = jnp.einsum("nm,bmo->bno", adj, out) + biases
    return out


if __name__ == "__main__":
    key = jax.random.PRNGKey(0)
    kx, ka, kw, kb = jax.random.split(key, 4)

    # --- Test 1: module demo shapes, exact f32 path (single fused kernel). ---
    B, N, in_dim, out_dim = 2, 8, 32, 32
    x = jax.random.normal(kx, (B, N, in_dim), jnp.float32)
    adj = jax.random.uniform(ka, (N, N), jnp.float32)
    weights, biases = init_params(kw, in_dim, out_dim)
    ref = reference(x, adj, weights, biases)

    out = jax.block_until_ready(graph_cnn_layer(x, adj, weights, biases))
    assert out.shape == (B, N, out_dim)
    assert jnp.allclose(out, ref, atol=1e-4, rtol=1e-4), "f32 fused path mismatch"

    # Same shapes with bf16 MXU operands (perf config) -> looser tolerance.
    out_bf = jax.block_until_ready(
        graph_cnn_layer(x, adj, weights, biases, mxu_dtype=jnp.bfloat16))
    assert jnp.allclose(out_bf, ref, atol=2e-1, rtol=5e-2), "bf16 fused mismatch"

    # --- Test 2: larger N -> general two-stage K-tiled path, A@(XW) branch. ---
    B2, N2, i2, o2 = 2, 300, 160, 32
    x2 = jax.random.normal(kx, (B2, N2, i2), jnp.float32)
    adj2 = jax.random.uniform(ka, (N2, N2), jnp.float32)
    w2, _ = init_params(kw, i2, o2)
    b2 = 0.1 * jax.random.normal(kb, (o2,), jnp.float32)
    ref2 = reference(x2, adj2, w2, b2)
    out2 = jax.block_until_ready(graph_cnn_layer(x2, adj2, w2, b2))
    assert out2.shape == (B2, N2, o2)
    assert jnp.allclose(out2, ref2, atol=1e-2, rtol=1e-3), "f32 general mismatch"

    # --- Test 3: B=1, (A@X)@W branch, bf16 MXU operands, general path. ---
    B3, N3, i3, o3 = 1, 300, 32, 96
    x3 = jax.random.normal(kx, (B3, N3, i3), jnp.float32)
    adj3 = jax.random.uniform(ka, (N3, N3), jnp.float32)
    w3, _ = init_params(kw, i3, o3)
    b3 = 0.1 * jax.random.normal(kb, (o3,), jnp.float32)
    ref3 = reference(x3, adj3, w3, b3)
    out3 = jax.block_until_ready(
        graph_cnn_layer(x3, adj3, w3, b3, mxu_dtype=jnp.bfloat16))
    assert out3.shape == (B3, N3, o3)
    assert jnp.allclose(out3, ref3, atol=1.0, rtol=5e-2), "bf16 general mismatch"

    print("KERNEL_OK")
</pallas_src>

<mosaic_0001>
module attributes {stable_mosaic.version = 11 : i64} {
  func.func @_fused_small_kernel(%arg0: i32, %arg1: memref<1x128x128xf32, #tpu.memory_space<vmem>>, %arg2: memref<128x128xf32, #tpu.memory_space<vmem>>, %arg3: memref<128x128xf32, #tpu.memory_space<vmem>>, %arg4: memref<1x128xf32, #tpu.memory_space<vmem>>, %arg5: memref<1x128x128xf32, #tpu.memory_space<vmem>>) attributes {dimension_semantics = [#tpu.dimension_semantics<parallel>], iteration_bounds = array<i64: 2>, scalar_prefetch = 0 : i64, scratch_operands = 0 : i64, tpu.core_type = #tpu.core_type<tc>, window_params = [{transform_indices = @transform_0, window_bounds = array<i64: 1, 128, 128>}, {pipeline_mode = #tpu.pipeline_mode<synchronous>, transform_indices = @transform_1, window_bounds = array<i64: 128, 128>}, {pipeline_mode = #tpu.pipeline_mode<synchronous>, transform_indices = @transform_2, window_bounds = array<i64: 128, 128>}, {pipeline_mode = #tpu.pipeline_mode<synchronous>, transform_indices = @transform_3, window_bounds = array<i64: 1, 128>}, {transform_indices = @transform_4, window_bounds = array<i64: 1, 128, 128>}]} {
    %c0 = arith.constant 0 : index
    %c0_0 = arith.constant 0 : index
    %c0_1 = arith.constant 0 : index
    %0 = vector.load %arg1[%c0, %c0_0, %c0_1] : memref<1x128x128xf32, #tpu.memory_space<vmem>>, vector<1x128x128xf32>
    %1 = vector.shape_cast %0 : vector<1x128x128xf32> to vector<128x128xf32>
    %c0_2 = arith.constant 0 : index
    %c0_3 = arith.constant 0 : index
    %2 = vector.load %arg3[%c0_2, %c0_3] : memref<128x128xf32, #tpu.memory_space<vmem>>, vector<128x128xf32>
    %cst = arith.constant dense<0.000000e+00> : vector<128x128xf32>
    %3 = tpu.matmul %2, %1, %cst {dimension_numbers = #tpu.dot_dimension_numbers<[1], [0], [0], [1], [0, 0, 1, 1], [], []>} : vector<128x128xf32>, vector<128x128xf32>, vector<128x128xf32> -> vector<128x128xf32>
    %c0_4 = arith.constant 0 : index
    %c0_5 = arith.constant 0 : index
    %4 = vector.load %arg2[%c0_4, %c0_5] : memref<128x128xf32, #tpu.memory_space<vmem>>, vector<128x128xf32>
    %cst_6 = arith.constant dense<0.000000e+00> : vector<128x128xf32>
    %5 = tpu.matmul %3, %4, %cst_6 {dimension_numbers = #tpu.dot_dimension_numbers<[1], [0], [0], [1], [0, 0, 1, 1], [], []>} : vector<128x128xf32>, vector<128x128xf32>, vector<128x128xf32> -> vector<128x128xf32>
    %c0_7 = arith.constant 0 : index
    %c0_8 = arith.constant 0 : index
    %6 = vector.load %arg4[%c0_7, %c0_8] : memref<1x128xf32, #tpu.memory_space<vmem>>, vector<1x128xf32>
    %7 = vector.broadcast %6 : vector<1x128xf32> to vector<128x128xf32>
    %8 = arith.addf %5, %7 : vector<128x128xf32>
    %c0_9 = arith.constant 0 : index
    %c0_10 = arith.constant 0 : index
    %c0_11 = arith.constant 0 : index
    %9 = vector.load %arg5[%c0_9, %c0_10, %c0_11] : memref<1x128x128xf32, #tpu.memory_space<vmem>>, vector<1x128x128xf32>
    %10 = vector.shape_cast %9 : vector<1x128x128xf32> to vector<128x128xf32>
    %11 = vector.shape_cast %8 : vector<128x128xf32> to vector<1x128x128xf32>
    tpu.vector_store %arg5[%c0_9, %c0_10, %c0_11], %11 {strides = array<i32>} : memref<1x128x128xf32, #tpu.memory_space<vmem>>, vector<1x128x128xf32>,
    return
  }
  func.func @transform_0(%arg0: i32) -> (i32, i32, i32) {
    %c0_i32 = arith.constant 0 : i32
    %c0_i32_0 = arith.constant 0 : i32
    %c0_i32_1 = arith.constant 0 : i32
    return %arg0, %c0_i32, %c0_i32_0 : i32, i32, i32
  }
  func.func @transform_1(%arg0: i32) -> (i32, i32) {
    %c0_i32 = arith.constant 0 : i32
    %c0_i32_0 = arith.constant 0 : i32
    %c0_i32_1 = arith.constant 0 : i32
    return %c0_i32, %c0_i32_0 : i32, i32
  }
  func.func @transform_2(%arg0: i32) -> (i32, i32) {
    %c0_i32 = arith.constant 0 : i32
    %c0_i32_0 = arith.constant 0 : i32
    %c0_i32_1 = arith.constant 0 : i32
    return %c0_i32, %c0_i32_0 : i32, i32
  }
  func.func @transform_3(%arg0: i32) -> (i32, i32) {
    %c0_i32 = arith.constant 0 : i32
    %c0_i32_0 = arith.constant 0 : i32
    %c0_i32_1 = arith.constant 0 : i32
    return %c0_i32, %c0_i32_0 : i32, i32
  }
  func.func @transform_4(%arg0: i32) -> (i32, i32, i32) {
    %c0_i32 = arith.constant 0 : i32
    %c0_i32_0 = arith.constant 0 : i32
    %c0_i32_1 = arith.constant 0 : i32
    return %arg0, %c0_i32, %c0_i32_0 : i32, i32, i32
  }
}

</mosaic_0001>

<bundles_post_ra>
// kernel: tpu_custom_call.1
= control target key start
LH: loop header
LB: loop body
LE: loop exit
PB: predicated region body
PF: predicated region fallthrough
CT: control target
= control target key end

     0   :  { %9 = vsyncpa [#allocation3], 0  ;;  %s1404_s0 = inlined_call_operand.hbm [shape: f32[2,128,128], index: 0, kind: input, shape index: {}]   ;;  %s1405_s1 = inlined_call_operand.hbm [shape: f32[128,128], index: 1, kind: input, shape index: {}]   ;;  %s1406_s2 = inlined_call_operand.hbm [shape: f32[128,128], index: 2, kind: input, shape index: {}]   ;;  %s1407_s3 = inlined_call_operand.vmem [shape: f32[1,128], index: 3, kind: input, shape index: {}]   ;;  %s1408_s4 = inlined_call_operand.hbm [shape: f32[2,128,128], index: 4, kind: output, shape index: {}]  }
   0x1   :  { %11 = vsyncpa [#allocation3 + $0x1], 0 }
   0x2   :  { %12 = vsyncpa [#allocation6], 0 }
   0x3   :  { %13 = vsyncpa [#allocation4], 0 }
   0x4   :  { %15 = vsyncpa [#allocation4 + $0x1], 0  ;;  %s1163_s15 = smov 0   ;;  %s1165_s16 = smov 0  }
   0x5   :  { %s1167_s17 = smov 0   ;;  %s1169_s18 = smov 0  }
   0x6 LB: > { %s1184_s19 = sadd.s32 4294967295, %s1128_s18   ;;  %s712_s20 = sadd.s32 4294967294, %s1128_s18   ;;  %s1128_s18 = sphi %s1169_s18, %s1429_s18   ;;  %s1124_s17 = sphi %s1167_s17, %s1428_s17   ;;  %s1120_s16 = sphi %s1165_s16, %s1427_s16   ;;  %s1116_s15 = sphi %s1163_s15, %s1426_s15  }
   0x7   : > { %p41_p0 = scmp.ne.s32.totalorder %s1120_s16, %s1116_s15  ;;  %p1409_p1 = scmp.eq.s32.totalorder %s1184_s19, 0 }
   0x8   : > { %p128_p2 = scmp.eq.s32.totalorder %s1184_s19, 1  ;;  %p134_p3 = scmp.eq.s32.totalorder %s712_s20, 1 }
   0x9   : > { %p1193_p4 = por %p1409_p1, %p41_p0  ;;  %p713_p5 = scmp.ge.s32.totalorder %s1128_s18, 1 }
   0xa   : > { %p1198_p6 = por %p134_p3, %p41_p0  ;;  %p141_p7 = scmp.lt.s32.totalorder %s1128_s18, 3 }
   0xb   : > { %s1413_s21 = scalar_select %p1193_p4, 1, 0 }
   0xc   : > { %s1414_s22 = scalar_select %p1198_p6, 1, 0 }
   0xd   : > { %p1203_p8 = pnand %p713_p5, %p141_p7  ;;  %s1130_s24 = smov [#allocation5]  }
   0xe   : > { %s153_s25 = sshll.u32 %s1130_s24, 4  ;;  %s1131_s27 = smov [#allocation7]   ;;  %s154_s25 = int_to_ptr.vmem [resolvable:$true] %s153_s25 }
   0xf   : > { %s1415_s23 = scalar_select %p1203_p8, 1, 0 }
  0x10   : > { %p921_p9 = pneg %p1203_p8  ;;  %s166_s28 = sshll.u32 %s1131_s27, 4  ;;  %s167_s28 = int_to_ptr.vmem [resolvable:$true] %s166_s28 }
  0x11   : > { %s991_s29 = scalar_lea.vmem %s154_s25, 2048  ;;  %p999_p5 = scmp.lt.s32.totalorder %s154_s25, %s154_s25 }
  0x12   : > { %p1212_p11 = pnand %p921_p9, %p1409_p1  ;;  %p992_p13 = scmp.ne.s32.totalorder %s154_s25, %s991_s29 }
  0x13   : > { %p1000_p7 = scmp.lt.s32.totalorder %s991_s29, %s991_s29 }
  0x14   : > { %p982_p12 = pneg %p1212_p11 }
  0x15   : > { %p1001_p10 = por %p1000_p7, %p999_p5 }
  0x16   : > { %p994_p0 = pnand %p992_p13, %p982_p12 }
  0x18   : > { %p995_p3 = pneg %p994_p0 }
  0x1a   : > { %p1002_p9 = pnand %p1001_p10, %p995_p3 }
  0x1c   : > { %1005 = shalt.err (!%p1002_p9)
}
  0x1d   : > { %s1132_s30 = smov 128   ;;  %s1133_s5 = smov 8  }
  0x1e   : > { %924 = dma.hbm_to_vmem [thread:$0]  (!%p1212_p11), %s1405_s1, 2048, %s154_s25, [#allocation6], %s1132_s30, %s1132_s30, %s1133_s5  }
  0x1f   : > { %s1017_s8 = scalar_lea.vmem %s167_s28, 2048  ;;  %p1025_p10 = scmp.lt.s32.totalorder %s167_s28, %s167_s28 }
  0x20   : > { %p1018_p13 = scmp.ne.s32.totalorder %s167_s28, %s1017_s8  ;;  %p1026_p3 = scmp.lt.s32.totalorder %s1017_s8, %s1017_s8 }
  0x22   : > { %p1020_p0 = pnand %p1018_p13, %p982_p12  ;;  %p1027_p7 = por %p1026_p3, %p1025_p10 }
  0x24   : > { %p1021_p5 = pneg %p1020_p0 }
  0x26   : > { %p1028_p9 = pnand %p1027_p7, %p1021_p5 }
  0x28   : > { %1031 = shalt.err (!%p1028_p9)
}
  0x29   : > { %927 = dma.hbm_to_vmem [thread:$0]  (!%p1212_p11), %s1406_s2, 2048, %s167_s28, [#allocation6], %s1132_s30, %s1132_s30, %s1133_s5  }
  0x2a   : > { %s1241_s11 = sadd.s32 1, %s1128_s18   ;;  %s28_s12 = sadd.s32 1, %s1124_s17 }
  0x2b   : > { %s25_s13 = ssub.s32 %s1128_s18, %s1241_s11  ;;  %p35_p12 = scmp.ne.s32.totalorder %s1124_s17, %s1120_s16 }
  0x2c   : > { %p26_p13 = scmp.eq.s32.totalorder %s25_s13, 0  ;;  %p36_p0 = scmp.eq.s32.totalorder %s1128_s18, 0 }
  0x2d   : > { %p1251_p5 = por %p128_p2, %p35_p12  ;;  %p938_p10 = scmp.lt.s32.totalorder %s1128_s18, 2 }
  0x2e   : > { %s1257_s20 = scalar_select %p26_p13, %s1124_s17, %s28_s12  }
  0x2f   : > { %s1417_s14 = scalar_select %p1251_p5, 1, 0 }
  0x30   : > { %p37_p3 = por %p36_p0, %p35_p12  ;;  %s183_s24 = sand.u32 1, %s1124_s17  }
  0x31   : > { %s717_s25 = sshll.u32 %s183_s24, 7  ;;  %s731_s26 = sshll.u32 %s1128_s18, 11 }
  0x32   : > { %s1264_s29 = scalar_lea.hbm %s1404_s0, %s731_s26  ;;  %s187_s6 = scalar_lea.vmem [#allocation2], %s717_s25 }
  0x33   : > { %s194_s7 = sshll.u32 %s187_s6, 4  ;;  %p1268_p2 = pnand %p938_p10, %p37_p3  ;;  %s1266_s7 = int_to_ptr.vmem [resolvable:$true] %s194_s7 }
  0x34   : > { %s1272_s9 = scalar_lea.sflag [#allocation3], %s183_s24  ;;  %s1032_s10 = scalar_lea.hbm %s1264_s29, 2048 }
  0x35   : > { %p1033_p11 = scmp.ne.s32.totalorder %s1264_s29, %s1032_s10  ;;  %p1034_p7 = pneg %p1268_p2 }
  0x36   : > { %s1037_s25 = scalar_lea.hbm %s1404_s0, 4096  ;;  %p1038_p13 = scmp.lt.s32.totalorder %s1264_s29, %s1404_s0 }
  0x37   : > { %p1035_p9 = pnand %p1034_p7, %p1033_p11  ;;  %p1039_p0 = scmp.lt.s32.totalorder %s1037_s25, %s1032_s10 }
  0x39   : > { %p1036_p12 = pneg %p1035_p9  ;;  %p1040_p10 = por %p1039_p0, %p1038_p13 }
  0x3b   : > { %p1041_p3 = pnand %p1040_p10, %p1036_p12 }
  0x3d   : > { %1044 = shalt.err (!%p1041_p3)
}
  0x3e   : > { %s1045_s24 = scalar_lea.vmem %s1266_s7, 2048  ;;  %s1134_s28 = smov [#allocation2]  }
  0x3f   : > { %p1046_p1 = scmp.ne.s32.totalorder %s1266_s7, %s1045_s24  ;;  %s1050_s6 = sshll.u32 %s1134_s28, 4  ;;  %s1051_s6 = int_to_ptr.vmem [resolvable:$false] %s1050_s6 }
  0x40   : > { %s1052_s12 = scalar_lea.vmem %s1051_s6, 4096  ;;  %p1053_p9 = scmp.lt.s32.totalorder %s1266_s7, %s1051_s6 }
  0x41   : > { %p1048_p6 = pnand %p1046_p1, %p1034_p7  ;;  %p1054_p5 = scmp.lt.s32.totalorder %s1052_s12, %s1045_s24 }
  0x43   : > { %p1049_p11 = pneg %p1048_p6  ;;  %p1055_p4 = por %p1054_p5, %p1053_p9 }
  0x45   : > { %p1056_p8 = pnand %p1055_p4, %p1049_p11 }
  0x47   : > { %1059 = shalt.err (!%p1056_p8)
}
  0x48   : > { %931 = dma.hbm_to_vmem [thread:$0]  (!%p1268_p2), %s1264_s29, 2048, %s1266_s7, %s1272_s9, %s1132_s30, %s1132_s30, %s1133_s5  }
  0x49   : > { %p1419_p1 = scmp.ne.s32.totalorder %s1415_s23, 0 }
  0x4a   : > { %s1299_s10 = sand.u32 (!%p1419_p1), 1, %s1120_s16   ;;  %p1420_p4 = scmp.ne.s32.totalorder (!%p1419_p1), %s1413_s21, 0 }
  0x4b   : > { %206 = sbr.rel (%p1419_p1) target bundleno = 552 (0x228), region = 36  ;;  %s721_s13 = sshll.u32 (!%p1419_p1), %s1299_s10, 7 }
  0x4c   : > { %s209_s25 = scalar_lea.sflag (!%p1419_p1), [#allocation3], %s1299_s10  ;;  %s1305_s8 = scalar_lea.vmem (!%p1419_p1), [#allocation2], %s721_s13 }
  0x50   : > { %1103 = dma.done.wait (%p1420_p4), %s209_s25, 2048  }
  0x51   : > { %1105 = vsyncadd (%p1420_p4), %s209_s25, 4294965248  ;;  %p1421_p6 = scmp.eq.s32.totalorder %s1184_s19, 0 }
  0x53   : > { %1107 = dma.done.wait (%p1421_p6), [#allocation6], 4096   ;;  %p1422_p8 = pmov %p1421_p6 }
  0x54   : > { %v260_v0 = vld [vmem:[%s1305_s8 + $0x78] sm:$0xff]  ;;  %v259_v1 = vld [vmem:[%s1305_s8 + $0x70] sm:$0xff]  ;;  %v258_v2 = vld [vmem:[%s1305_s8 + $0x68] sm:$0xff]  ;;  %s1336_s30 = scalar_lea.vmem [#allocation8], %s721_s13  ;;  %s732_s5 = sshll.u32 %s1184_s19, 11 }
  0x55   : > { %1109 = vsyncadd (%p1422_p8), [#allocation6], 4294963200  ;;  %797 = vmatprep.subr.mxu0 %v260_v0  ;;  %v257_v3 = vld [vmem:[%s1305_s8 + $0x60] sm:$0xff]  ;;  %v256_v5 = vld [vmem:[%s1305_s8 + $0x58] sm:$0xff]  ;;  %s620_s29 = sshll.u32 %s1336_s30, 4  ;;  %s1357_s26 = scalar_lea.hbm %s1408_s4, %s732_s5  ;;  %s1359_s29 = int_to_ptr.vmem [resolvable:$true] %s620_s29 }
  0x56   : > { %798 = vmatpush3.msra.mxu0 %v260_v0  ;;  %v261_v4 = vld [vmem:[#allocation7] sm:$0xff]  ;;  %v255_v6 = vld [vmem:[%s1305_s8 + $0x50] sm:$0xff]  ;;  %v254_v7 = vld [vmem:[%s1305_s8 + $0x48] sm:$0xff]  ;;  %s607_s27 = scalar_lea.sflag [#allocation4], %s1299_s10  ;;  %s1060_s19 = scalar_lea.vmem %s1359_s29, 2048 }
  0x57   : > { %799 = vmatprep.subr.mxu0 %v259_v1  ;;  %829 = vmatprep.mubr.f32.mxu0 %v261_v4  ;;  %v437_v8 = vld [vmem:[#allocation5 + $0x78] sm:$0xff]  ;;  %v436_v9 = vld [vmem:[#allocation5 + $0x70] sm:$0xff]  ;;  %v253_v10 = vld [vmem:[%s1305_s8 + $0x40] sm:$0xff]  ;;  %p1061_p5 = scmp.ne.s32.totalorder %s1359_s29, %s1060_s19  ;;  %p1423_p2 = scmp.ne.s32.totalorder %s1417_s14, 0 }
  0x58   : > { %800 = vmatpush3.msra.mxu0 %v259_v1  ;;  %853 = vmatprep.subr.mxu1 %v437_v8  ;;  %v435_v11 = vld [vmem:[#allocation5 + $0x68] sm:$0xff]  ;;  %v252_v12 = vld [vmem:[%s1305_s8 + $0x38] sm:$0xff]  ;;  %v434_v13 = vld [vmem:[#allocation5 + $0x60] sm:$0xff]  ;;  %s1135_s24 = smov [#allocation8]  }
  0x59   : > { %801 = vmatprep.subr.mxu0 %v258_v2  ;;  %854 = vmatpush3.msra.mxu1 %v437_v8  ;;  %v251_v14 = vld [vmem:[%s1305_s8 + $0x30] sm:$0xff]  ;;  %v433_v15 = vld [vmem:[#allocation5 + $0x58] sm:$0xff]  ;;  %v250_v16 = vld [vmem:[%s1305_s8 + $0x28] sm:$0xff]  ;;  %p1062_p7 = pnand %p1061_p5, %p1423_p2  ;;  %s1064_s28 = sshll.u32 %s1135_s24, 4  ;;  %s1065_s28 = int_to_ptr.vmem [resolvable:$false] %s1064_s28 }
  0x5a   : > { %802 = vmatpush3.msra.mxu0 %v258_v2  ;;  %855 = vmatprep.subr.mxu1 %v436_v9  ;;  %v432_v17 = vld [vmem:[#allocation5 + $0x50] sm:$0xff]  ;;  %v249_v18 = vld [vmem:[%s1305_s8 + $0x20] sm:$0xff]  ;;  %v431_v19 = vld [vmem:[#allocation5 + $0x48] sm:$0xff]  ;;  %s1066_s6 = scalar_lea.vmem %s1065_s28, 4096  ;;  %p1067_p13 = scmp.lt.s32.totalorder %s1359_s29, %s1065_s28 }
  0x5b   : > { %803 = vmatprep.subr.mxu0 %v257_v3  ;;  %856 = vmatpush3.msra.mxu1 %v436_v9  ;;  %v248_v20 = vld [vmem:[%s1305_s8 + $0x18] sm:$0xff]  ;;  %v430_v21 = vld [vmem:[#allocation5 + $0x40] sm:$0xff]  ;;  %v247_v22 = vld [vmem:[%s1305_s8 + $0x10] sm:$0xff]  ;;  %p1063_p12 = pneg %p1062_p7  ;;  %p1068_p0 = scmp.lt.s32.totalorder %s1066_s6, %s1060_s19 }
  0x5c   : > { %804 = vmatpush3.msra.mxu0 %v257_v3  ;;  %857 = vmatprep.subr.mxu1 %v435_v11  ;;  %v429_v23 = vld [vmem:[#allocation5 + $0x38] sm:$0xff]  ;;  %v246_v24 = vld [vmem:[%s1305_s8 + $0x8] sm:$0xff]  ;;  %v428_v25 = vld [vmem:[#allocation5 + $0x30] sm:$0xff] }
  0x5d   : > { %805 = vmatprep.subr.mxu0 %v256_v5  ;;  %858 = vmatpush3.msra.mxu1 %v435_v11  ;;  %v245_v26 = vld [vmem:[%s1305_s8] sm:$0xff]  ;;  %v427_v27 = vld [vmem:[#allocation5 + $0x28] sm:$0xff]  ;;  %v263_v30 = vld [vmem:[#allocation7 + $0x10] sm:$0xff]  ;;  %p1069_p10 = por %p1068_p0, %p1067_p13 }
  0x5e   : > { %806 = vmatpush3.msra.mxu0 %v256_v5  ;;  %859 = vmatprep.subr.mxu1 %v434_v13  ;;  %v262_v28 = vld [vmem:[#allocation7 + $0x8] sm:$0xff]  ;;  %v426_v29 = vld [vmem:[#allocation5 + $0x20] sm:$0xff]  ;;  %v425_v31 = vld [vmem:[#allocation5 + $0x18] sm:$0xff] }
  0x5f   : > { %807 = vmatprep.subr.mxu0 %v255_v6  ;;  %860 = vmatpush3.msra.mxu1 %v434_v13  ;;  %v264_v32 = vld [vmem:[#allocation7 + $0x18] sm:$0xff]  ;;  %v424_v33 = vld [vmem:[#allocation5 + $0x10] sm:$0xff]  ;;  %v265_v34 = vld [vmem:[#allocation7 + $0x20] sm:$0xff]  ;;  %p1070_p3 = pnand %p1069_p10, %p1063_p12 }
  0x60   : > { %808 = vmatpush3.msra.mxu0 %v255_v6  ;;  %861 = vmatprep.subr.mxu1 %v433_v15  ;;  %v266_v35 = vld [vmem:[#allocation7 + $0x28] sm:$0xff]  ;;  %v267_v36 = vld [vmem:[#allocation7 + $0x30] sm:$0xff]  ;;  %v268_v37 = vld [vmem:[#allocation7 + $0x38] sm:$0xff] }
  0x61   : > { %809 = vmatprep.subr.mxu0 %v254_v7  ;;  %862 = vmatpush3.msra.mxu1 %v433_v15  ;;  %v269_v38 = vld [vmem:[#allocation7 + $0x40] sm:$0xff]  ;;  %v270_v39 = vld [vmem:[#allocation7 + $0x48] sm:$0xff]  ;;  %v271_v40 = vld [vmem:[#allocation7 + $0x50] sm:$0xff] }
  0x62   : > { %810 = vmatpush3.msra.mxu0 %v254_v7  ;;  %863 = vmatprep.subr.mxu1 %v432_v17  ;;  %v272_v41 = vld [vmem:[#allocation7 + $0x58] sm:$0xff]  ;;  %v273_v42 = vld [vmem:[#allocation7 + $0x60] sm:$0xff]  ;;  %v274_v43 = vld [vmem:[#allocation7 + $0x68] sm:$0xff] }
  0x63   : > { %811 = vmatprep.subr.mxu0 %v253_v10  ;;  %864 = vmatpush3.msra.mxu1 %v432_v17  ;;  %v275_v44 = vld [vmem:[#allocation7 + $0x70] sm:$0xff]  ;;  %v276_v45 = vld [vmem:[#allocation7 + $0x78] sm:$0xff]  ;;  %v423_v46 = vld [vmem:[#allocation5 + $0x8] sm:$0xff] }
  0x64   : > { %812 = vmatpush3.msra.mxu0 %v253_v10  ;;  %865 = vmatprep.subr.mxu1 %v431_v19  ;;  %v422_v47 = vld [vmem:[#allocation5] sm:$0xff] }
  0x65   : > { %813 = vmatprep.subr.mxu0 %v252_v12  ;;  %866 = vmatpush3.msra.mxu1 %v431_v19  ;;  %v725_v0 = vld [vmem:[%s1407_s3] ss:$0 sm:$0xff] }
  0x66   : > { %814 = vmatpush3.msra.mxu0 %v252_v12  ;;  %867 = vmatprep.subr.mxu1 %v430_v21 }
  0x67   : > { %815 = vmatprep.subr.mxu0 %v251_v14  ;;  %868 = vmatpush3.msra.mxu1 %v430_v21 }
  0x68   : > { %816 = vmatpush3.msra.mxu0 %v251_v14  ;;  %869 = vmatprep.subr.mxu1 %v429_v23 }
  0x69   : > { %817 = vmatprep.subr.mxu0 %v250_v16  ;;  %870 = vmatpush3.msra.mxu1 %v429_v23 }
  0x6a   : > { %818 = vmatpush3.msra.mxu0 %v250_v16  ;;  %871 = vmatprep.subr.mxu1 %v428_v25 }
  0x6b   : > { %819 = vmatprep.subr.mxu0 %v249_v18  ;;  %872 = vmatpush3.msra.mxu1 %v428_v25 }
  0x6c   : > { %820 = vmatpush3.msra.mxu0 %v249_v18  ;;  %873 = vmatprep.subr.mxu1 %v427_v27 }
  0x6d   : > { %821 = vmatprep.subr.mxu0 %v248_v20  ;;  %874 = vmatpush3.msra.mxu1 %v427_v27 }
  0x6e   : > { %822 = vmatpush3.msra.mxu0 %v248_v20  ;;  %875 = vmatprep.subr.mxu1 %v426_v29 }
  0x6f   : > { %823 = vmatprep.subr.mxu0 %v247_v22  ;;  %876 = vmatpush3.msra.mxu1 %v426_v29 }
  0x70   : > { %824 = vmatpush3.msra.mxu0 %v247_v22  ;;  %877 = vmatprep.subr.mxu1 %v425_v31 }
  0x71   : > { %825 = vmatprep.subr.mxu0 %v246_v24  ;;  %878 = vmatpush3.msra.mxu1 %v425_v31 }
  0x72   : > { %826 = vmatpush3.msra.mxu0 %v246_v24  ;;  %879 = vmatprep.subr.mxu1 %v424_v33 }
  0x73   : > { %827 = vmatprep.subr.mxu0 %v245_v26  ;;  %880 = vmatpush3.msra.mxu1 %v424_v33 }
  0x74   : > { %828 = vmatpush3.msra.mxu0 %v245_v26  ;;  %881 = vmatprep.subr.mxu1 %v423_v46 }
  0x75   : > { %830 = vmatmul.mubr.f32.vlgmr.msra.gmra.mxu0 %v262_v28  ;;  %882 = vmatpush3.msra.mxu1 %v423_v46 }
  0x76   : > { %832 = vmatprep.mubr.f32.mxu0 %v263_v30  ;;  %883 = vmatprep.subr.mxu1 %v422_v47 }
  0x77   : > { %884 = vmatpush3.msra.mxu1 %v422_v47 }
  0x79   : > { %833 = vmatmul.mubr.f32.gmra.mxu0 %v264_v32 }
  0x7a   : > { %835 = vmatprep.mubr.f32.mxu0 %v265_v34 }
  0x7d   : > { %836 = vmatmul.mubr.f32.gmra.mxu0 %v266_v35 }
  0x7e   : > { %838 = vmatprep.mubr.f32.mxu0 %v267_v36 }
  0x81   : > { %839 = vmatmul.mubr.f32.gmra.mxu0 %v268_v37 }
  0x82   : > { %841 = vmatprep.mubr.f32.mxu0 %v269_v38 }
  0x85   : > { %842 = vmatmul.mubr.f32.gmra.mxu0 %v270_v39 }
  0x86   : > { %844 = vmatprep.mubr.f32.mxu0 %v271_v40 }
  0x89   : > { %845 = vmatmul.mubr.f32.gmra.mxu0 %v272_v41 }
  0x8a   : > { %847 = vmatprep.mubr.f32.mxu0 %v273_v42 }
  0x8d   : > { %848 = vmatmul.mubr.f32.gmra.mxu0 %v274_v43 }
  0x8e   : > { %850 = vmatprep.mubr.f32.mxu0 %v275_v44 }
  0x91   : > { %851 = vmatmul.mubr.f32.gmra.mxu0 %v276_v45 }
 0x135   : > { %v831_v48 = vpop.f32.mrf.mxu0 }
 0x137   : > { %v343_v49 = vpop.f32.mrf.mxu0 }
 0x138   : > { %885 = vmatprep.mubr.f32.mxu1 %v343_v49 }
 0x139   : > { %v834_v50 = vpop.f32.mrf.mxu0  ;;  %886 = vmatmul.mubr.f32.vlgmr.msra.gmra.mxu1 %v831_v48 }
 0x13b   : > { %v353_v51 = vpop.f32.mrf.mxu0 }
 0x13c   : > { %888 = vmatprep.mubr.f32.mxu1 %v353_v51 }
 0x13d   : > { %v837_v52 = vpop.f32.mrf.mxu0  ;;  %889 = vmatmul.mubr.f32.gmra.mxu1 %v834_v50 }
 0x13f   : > { %v363_v53 = vpop.f32.mrf.mxu0 }
 0x140   : > { %891 = vmatprep.mubr.f32.mxu1 %v363_v53 }
 0x141   : > { %v840_v54 = vpop.f32.mrf.mxu0  ;;  %892 = vmatmul.mubr.f32.gmra.mxu1 %v837_v52 }
 0x143   : > { %v373_v55 = vpop.f32.mrf.mxu0 }
 0x144   : > { %894 = vmatprep.mubr.f32.mxu1 %v373_v55 }
 0x145   : > { %v843_v56 = vpop.f32.mrf.mxu0  ;;  %895 = vmatmul.mubr.f32.gmra.mxu1 %v840_v54 }
 0x147   : > { %v383_v57 = vpop.f32.mrf.mxu0 }
 0x148   : > { %897 = vmatprep.mubr.f32.mxu1 %v383_v57 }
 0x149   : > { %v846_v58 = vpop.f32.mrf.mxu0  ;;  %898 = vmatmul.mubr.f32.gmra.mxu1 %v843_v56 }
 0x14b   : > { %v393_v59 = vpop.f32.mrf.mxu0 }
 0x14c   : > { %900 = vmatprep.mubr.f32.mxu1 %v393_v59 }
 0x14d   : > { %v849_v60 = vpop.f32.mrf.mxu0  ;;  %901 = vmatmul.mubr.f32.gmra.mxu1 %v846_v58 }
 0x14f   : > { %v403_v61 = vpop.f32.mrf.mxu0 }
 0x150   : > { %903 = vmatprep.mubr.f32.mxu1 %v403_v61 }
 0x151   : > { %v852_v62 = vpop.f32.mrf.mxu0  ;;  %904 = vmatmul.mubr.f32.gmra.mxu1 %v849_v60 }
 0x153   : > { %v413_v63 = vpop.f32.mrf.mxu0 }
 0x154   : > { %906 = vmatprep.mubr.f32.mxu1 %v413_v63 }
 0x155   : > { %907 = vmatmul.mubr.f32.gmra.mxu1 %v852_v62 }
 0x1f9   : > { %v887_v1 = vpop.f32.mrf.mxu1 }
 0x1fa   : > { %v517_v2 = vadd.f32 %v887_v1, %v725_v0 }
 0x1fb   : > { %v511_v3 = vpop.f32.mrf.mxu1 }
 0x1fc   : > { %591 = vst [vmem:[%s1336_s30 + $0x8] sm:$0xff] %v517_v2  ;;  %v512_v4 = vadd.f32 %v725_v0, %v511_v3 }
 0x1fd   : > { %v890_v5 = vpop.f32.mrf.mxu1 }
 0x1fe   : > { %590 = vst [vmem:[%s1336_s30] sm:$0xff] %v512_v4  ;;  %v527_v6 = vadd.f32 %v890_v5, %v725_v0 }
 0x1ff   : > { %v521_v7 = vpop.f32.mrf.mxu1 }
 0x200   : > { %593 = vst [vmem:[%s1336_s30 + $0x18] sm:$0xff] %v527_v6  ;;  %v522_v8 = vadd.f32 %v725_v0, %v521_v7 }
 0x201   : > { %v893_v9 = vpop.f32.mrf.mxu1 }
 0x202   : > { %592 = vst [vmem:[%s1336_s30 + $0x10] sm:$0xff] %v522_v8  ;;  %v537_v10 = vadd.f32 %v893_v9, %v725_v0 }
 0x203   : > { %v531_v11 = vpop.f32.mrf.mxu1 }
 0x204   : > { %595 = vst [vmem:[%s1336_s30 + $0x28] sm:$0xff] %v537_v10  ;;  %v532_v12 = vadd.f32 %v725_v0, %v531_v11 }
 0x205   : > { %v896_v13 = vpop.f32.mrf.mxu1 }
 0x206   : > { %594 = vst [vmem:[%s1336_s30 + $0x20] sm:$0xff] %v532_v12  ;;  %v547_v14 = vadd.f32 %v896_v13, %v725_v0 }
 0x207   : > { %v541_v15 = vpop.f32.mrf.mxu1 }
 0x208   : > { %597 = vst [vmem:[%s1336_s30 + $0x38] sm:$0xff] %v547_v14  ;;  %v542_v16 = vadd.f32 %v725_v0, %v541_v15 }
 0x209   : > { %v899_v17 = vpop.f32.mrf.mxu1 }
 0x20a   : > { %596 = vst [vmem:[%s1336_s30 + $0x30] sm:$0xff] %v542_v16  ;;  %v557_v18 = vadd.f32 %v899_v17, %v725_v0 }
 0x20b   : > { %v551_v19 = vpop.f32.mrf.mxu1 }
 0x20c   : > { %599 = vst [vmem:[%s1336_s30 + $0x48] sm:$0xff] %v557_v18  ;;  %v552_v20 = vadd.f32 %v725_v0, %v551_v19 }
 0x20d   : > { %v902_v21 = vpop.f32.mrf.mxu1 }
 0x20e   : > { %598 = vst [vmem:[%s1336_s30 + $0x40] sm:$0xff] %v552_v20  ;;  %v567_v22 = vadd.f32 %v902_v21, %v725_v0 }
 0x20f   : > { %v561_v23 = vpop.f32.mrf.mxu1 }
 0x210   : > { %601 = vst [vmem:[%s1336_s30 + $0x58] sm:$0xff] %v567_v22  ;;  %v562_v24 = vadd.f32 %v725_v0, %v561_v23 }
 0x211   : > { %v905_v25 = vpop.f32.mrf.mxu1 }
 0x212   : > { %600 = vst [vmem:[%s1336_s30 + $0x50] sm:$0xff] %v562_v24  ;;  %v577_v26 = vadd.f32 %v905_v25, %v725_v0 }
 0x213   : > { %v571_v27 = vpop.f32.mrf.mxu1 }
 0x214   : > { %603 = vst [vmem:[%s1336_s30 + $0x68] sm:$0xff] %v577_v26  ;;  %v572_v28 = vadd.f32 %v725_v0, %v571_v27 }
 0x215   : > { %v908_v29 = vpop.f32.mrf.mxu1 }
 0x216   : > { %602 = vst [vmem:[%s1336_s30 + $0x60] sm:$0xff] %v572_v28  ;;  %v587_v30 = vadd.f32 %v908_v29, %v725_v0 }
 0x217   : > { %v581_v31 = vpop.f32.mrf.mxu1 }
 0x218   : > { %605 = vst [vmem:[%s1336_s30 + $0x78] sm:$0xff] %v587_v30  ;;  %v582_v32 = vadd.f32 %v725_v0, %v581_v31 }
 0x21a   : > { %604 = vst [vmem:[%s1336_s30 + $0x70] sm:$0xff] %v582_v32 }
 0x21b   : > { %1073 = shalt.err (!%p1070_p3)
}
 0x21c   : > { %s1074_s12 = scalar_lea.hbm %s1357_s26, 2048  ;;  %s1078_s8 = scalar_lea.hbm %s1408_s4, 4096 }
 0x21d   : > { %p1075_p11 = scmp.ne.s32.totalorder %s1357_s26, %s1074_s12  ;;  %p1079_p4 = scmp.lt.s32.totalorder %s1357_s26, %s1408_s4 }
 0x21e   : > { %p1080_p6 = scmp.lt.s32.totalorder %s1078_s8, %s1074_s12 }
 0x21f   : > { %p1076_p9 = pnand %p1075_p11, %p1423_p2 }
 0x220   : > { %p1081_p8 = por %p1080_p6, %p1079_p4 }
 0x221   : > { %p1077_p1 = pneg %p1076_p9 }
 0x223   : > { %p1082_p5 = pnand %p1081_p8, %p1077_p1 }
 0x225   : > { %1085 = shalt.err (!%p1082_p5)
}
 0x226   : > { %s1136_s30 = smov 128   ;;  %s1137_s5 = smov 8  }
 0x227   : > { %919 = dma.vmem_to_hbm [thread:$0]  (%p1423_p2), %s1359_s29, 2048, %s1357_s26, %s607_s27, %s1136_s30, %s1136_s30, %s1137_s5  }
 0x228 PF: > { %s635_s7 = sand.u32 1, %s1116_s15   ;;  %p1424_p7 = scmp.ne.s32.totalorder %s1414_s22, 0 }
 0x229   : > { %p1425_p12 = scmp.ge.s32.totalorder %s1128_s18, 2  ;;  %s636_s9 = scalar_lea.sflag [#allocation4], %s635_s7 }
 0x22b   : > { %p933_p13 = pnand %p1425_p12, %p1424_p7 }
 0x22d   : > { %p934_p0 = pneg %p933_p13 }
 0x22f   : > { %1111 = dma.done.wait (%p934_p0), %s636_s9, 2048  }
 0x230   : > { %1113 = vsyncadd (%p934_p0), %s636_s9, 4294965248  ;;  %p18_p10 = scmp.ge.s32.totalorder %s1241_s11, 4   ;;  %s1426_s15 = smov %s1120_s16 }
 0x231   : > { %s1427_s16 = smov %s1124_s17  ;;  %s1428_s17 = smov %s1257_s20 }
 0x232   : > { %s1429_s18 = smov %s1241_s11  ;;  %20 = sbr.rel (!%p18_p10) target bundleno = 6 (0x6), region = 89 }
 0x237   :  { %641 = vsyncpa [#allocation3], 1 }
 0x238   :  { %643 = vsyncpa [#allocation3 + $0x1], 1 }
 0x239   :  { %644 = vsyncpa [#allocation6], 1 }
 0x23a   :  { %645 = vsyncpa [#allocation4], 1 }
 0x23b   :  { %647 = vsyncpa [#allocation4 + $0x1], 1 }

</bundles_post_ra>
